<compile_context>
chip_gen: v7x
topology: tpu7x:2x2x1
jax: 0.10.0
libtpu: 0.0.40
codegen_flags: <defaults>
</compile_context>

<pallas_src>
import functools

import jax
import jax.numpy as jnp
from jax.experimental import pallas as pl
from jax.experimental.pallas import tpu as pltpu

FEAT = 365            # backbone output features (Places365 classes)
NCLASS = 10           # NIMA score buckets
FEAT_PAD = 384        # 365 rounded up to a multiple of 128
NCLASS_PAD = 128      # lane-dense output block
NEG_BIG = -1e30       # masks padded classes out of the (f32) softmax


def _cdiv(a: int, b: int) -> int:
    return -(-a // b)


def _vmem_capacity_bytes() -> int:
    """Physical VMEM per core; falls back to the smallest (v7x = 64 MiB) if unknown."""
    try:
        info = pltpu.get_tpu_info()
        cap = getattr(info, "vmem_capacity_bytes", None)
        if cap:
            return int(cap)
    except Exception:
        pass
    return 64 * 1024 * 1024


def nima_kernel(x_ref, wb_ref, bb_ref, wh_ref, bh_ref, o_ref, acc_ref, *, inv_hw):
    # x_ref : (TB, C, THW)        activation tile, native NCHW layout (lane axis = HW)
    # wb_ref: (C, FEAT_PAD)       bf16 backbone-tail fc (VMEM resident, single buffered)
    # bb_ref: (1, FEAT_PAD)       f32
    # wh_ref: (FEAT_PAD, 128)     bf16 head Linear(365, 10), zero-padded
    # bh_ref: (1, 128)            f32, padded entries = -1e30
    # o_ref : (TB, 128)           f32 softmax probabilities (lane-dense)
    # acc_ref: (TB, C)            f32 running HW-sum (VMEM scratch, persists over the HW axis)
    h = pl.program_id(1)

    @pl.when(h == 0)
    def _init():
        acc_ref[...] = jnp.zeros_like(acc_ref)

    # Partial global-average-pool: f32 lane reduce (XLU) over this HW tile, accumulated
    # across the innermost ("arbitrary") HW grid axis.  Input is streamed as-is (f32).
    acc_ref[...] += jnp.sum(x_ref[...], axis=-1, dtype=jnp.float32)

    @pl.when(h == pl.num_programs(1) - 1)
    def _finalize():
        pooled = acc_ref[...] * inv_hw                                   # (TB, C) f32 mean
        feats = jnp.dot(pooled.astype(jnp.bfloat16), wb_ref[...],
                        preferred_element_type=jnp.float32) + bb_ref[...]  # (TB, FEAT_PAD)
        # head: ReLU -> Dropout(p=0.75) (identity at inference) -> Linear -> Softmax
        hidden = jnp.maximum(feats, 0.0)
        logits = jnp.dot(hidden.astype(jnp.bfloat16), wh_ref[...],
                         preferred_element_type=jnp.float32) + bh_ref[...]  # (TB, 128) f32
        m = jnp.max(logits, axis=-1, keepdims=True)
        e = jnp.exp(logits - m)                                          # padded lanes: exp(-1e30) == 0
        o_ref[...] = e * pl.reciprocal(jnp.sum(e, axis=-1, keepdims=True), approx=True)


def _pick_thw(HW: int, C: int, itemsize: int, budget_bytes: int, requested=None) -> int:
    if requested is not None:
        thw = int(requested)
        assert HW % thw == 0 and (thw % 128 == 0 or thw == HW), (
            "thw must divide HW and be a multiple of 128 (or equal HW)")
        return thw
    # Largest multiple of 128 that divides HW and keeps one (C, THW) row-slab under budget.
    thw = 0
    t = 128
    while t <= HW:
        if HW % t == 0 and C * t * itemsize <= budget_bytes:
            thw = t
        t += 128
    return thw if thw > 0 else HW        # full-dim block if HW has no 128-multiple divisor


def nima_forward(x_nchw, wb, bb, wh, bh, *, tb=None, thw=None):
    """x_nchw: (B, C, H, W); wb: (C, 365); bb: (1, 365); wh: (365, 10); bh: (1, 10)."""
    B, C, H, W = x_nchw.shape
    HW = H * W

    # Native layout: (B, C, H, W) -> (B, C, HW) is a free, contiguous reshape.  No transpose,
    # no cast, no padded activation copy -- the kernel reads the producer's output directly.
    x = x_nchw.reshape(B, C, HW)
    itemsize = jnp.dtype(x.dtype).itemsize

    # --- per-chip budgets ----------------------------------------------------------------
    vmem_cap = _vmem_capacity_bytes()
    x_block_budget = max(1 << 20, vmem_cap // 8)       # 2 pipeline buffers <= vmem_cap / 4
    vmem_limit = min(vmem_cap * 3 // 4, 96 * 1024 * 1024)

    # --- tile sizes ------------------------------------------------------------------------
    THW = _pick_thw(HW, C, itemsize, x_block_budget, thw)
    n_h = HW // THW

    slab = C * THW * itemsize                           # bytes of one batch row per block
    if tb is not None:
        TB = max(1, min(int(tb), B))
    else:
        TB = max(1, min(B, x_block_budget // max(1, slab)))
        if _cdiv(B, TB) == 1 and B >= 2:
            TB = _cdiv(B, 2)                            # >=2 batch tiles -> both v7x cores busy
    n_b = _cdiv(B, TB)
    # TODO(synk): for B == 1 on v7x the parallel axis has extent 1 (one core idles); splitting
    # the HW reduction into two partial accumulators would recover it but is not done here.

    # --- pad / cast the tiny weights (zero weight cols, -1e30 bias on padded classes) -------
    wb_p = (jnp.zeros((C, FEAT_PAD), jnp.float32)
            .at[:, :FEAT].set(wb.astype(jnp.float32))).astype(jnp.bfloat16)
    bb_p = jnp.zeros((1, FEAT_PAD), jnp.float32).at[:, :FEAT].set(bb.astype(jnp.float32))
    wh_p = (jnp.zeros((FEAT_PAD, NCLASS_PAD), jnp.float32)
            .at[:FEAT, :NCLASS].set(wh.astype(jnp.float32))).astype(jnp.bfloat16)
    bh_p = jnp.full((1, NCLASS_PAD), NEG_BIG, jnp.float32).at[:, :NCLASS].set(
        bh.astype(jnp.float32))

    grid = (n_b, n_h)   # batch tiles (parallel), HW reduction tiles (arbitrary, innermost)

    out = pl.pallas_call(
        functools.partial(nima_kernel, inv_hw=float(1.0 / HW)),
        out_shape=jax.ShapeDtypeStruct((n_b, TB, NCLASS_PAD), jnp.float32),
        grid_spec=pltpu.PrefetchScalarGridSpec(
            num_scalar_prefetch=0,
            grid=grid,
            in_specs=[
                # activation tiles: last two dims (C, THW) are (full-dim, multiple of 128)
                pl.BlockSpec((TB, C, THW), lambda b, h: (b, 0, h)),
                # constant-index weights/biases: whole-array VMEM residents (single buffered)
                pl.BlockSpec(memory_space=pltpu.MemorySpace.VMEM),   # wb
                pl.BlockSpec(memory_space=pltpu.MemorySpace.VMEM),   # bb
                pl.BlockSpec(memory_space=pltpu.MemorySpace.VMEM),   # wh
                pl.BlockSpec(memory_space=pltpu.MemorySpace.VMEM),   # bh
            ],
            # 3-D output with the batch-tile axis squeezed out: the stored block is
            # (TB, 128) = (full dim, lane-dense), valid for any TB (no batch padding).
            out_specs=pl.BlockSpec((None, TB, NCLASS_PAD), lambda b, h: (b, 0, 0)),
            scratch_shapes=[pltpu.VMEM((TB, C), jnp.float32)],
        ),
        compiler_params=pltpu.CompilerParams(
            dimension_semantics=("parallel", "arbitrary"),
            vmem_limit_bytes=int(vmem_limit),
        ),
    )(x, wb_p, bb_p, wh_p, bh_p)

    return out.reshape(n_b * TB, NCLASS_PAD)[:B, :NCLASS]


if __name__ == "__main__":
    key = jax.random.PRNGKey(0)
    k1, k2, k3, k4, k5 = jax.random.split(key, 5)

    B, C, H, W = 2, 4, 16, 16
    x = jax.random.normal(k1, (B, C, H, W), jnp.float32)

    # deterministic synthetic parameters (shapes from the module definition)
    wb = jax.random.normal(k2, (C, FEAT), jnp.float32) * 0.1        # backbone-tail fc
    bb = jax.random.normal(k3, (1, FEAT), jnp.float32) * 0.1
    wh = jax.random.normal(k4, (FEAT, NCLASS), jnp.float32) * 0.05  # head Linear(365, 10)
    bh = jax.random.normal(k5, (1, NCLASS), jnp.float32) * 0.05

    # thw=128 -> 2 HW grid steps (exercises the pipelined accumulator path);
    # B=2 -> 2 batch tiles on the "parallel" axis (exercises the megacore split).
    out = nima_forward(x, wb, bb, wh, bh, thw=128)
    jax.block_until_ready(out)

    assert out.shape == (B, NCLASS)
    # softmax rows must sum to ~1 (approx=True reciprocal -> ~2^-12 relative error)
    assert bool(jnp.all(jnp.abs(jnp.sum(out, axis=1) - 1.0) < 5e-3))

    # cross-check against a plain-JAX f32 reference (bf16-matmul tolerant)
    pooled_ref = jnp.mean(x.reshape(B, C, H * W), axis=-1)
    feats_ref = pooled_ref @ wb + bb
    logits_ref = jnp.maximum(feats_ref, 0.0) @ wh + bh
    ref = jax.nn.softmax(logits_ref, axis=1)
    assert bool(jnp.all(jnp.abs(out - ref) < 2e-2)), "mismatch vs plain-JAX reference"

    print("KERNEL_OK")
</pallas_src>

<mosaic_0001>
module attributes {stable_mosaic.version = 11 : i64} {
  func.func @nima_kernel(%arg0: i32, %arg1: i32, %arg2: memref<1x4x128xf32, #tpu.memory_space<vmem>>, %arg3: memref<4x384xbf16, #tpu.memory_space<vmem>>, %arg4: memref<1x384xf32, #tpu.memory_space<vmem>>, %arg5: memref<384x128xbf16, #tpu.memory_space<vmem>>, %arg6: memref<1x128xf32, #tpu.memory_space<vmem>>, %arg7: memref<1x1x128xf32, #tpu.memory_space<vmem>>, %arg8: memref<1x4xf32, #tpu.memory_space<vmem>>) attributes {dimension_semantics = [#tpu.dimension_semantics<parallel>, #tpu.dimension_semantics<arbitrary>], iteration_bounds = array<i64: 2, 2>, scalar_prefetch = 0 : i64, scratch_operands = 1 : i64, tpu.core_type = #tpu.core_type<tc>, window_params = [{transform_indices = @transform_0, window_bounds = array<i64: 1, 4, 128>}, {pipeline_mode = #tpu.pipeline_mode<synchronous>, transform_indices = @transform_1, window_bounds = array<i64: 4, 384>}, {pipeline_mode = #tpu.pipeline_mode<synchronous>, transform_indices = @transform_2, window_bounds = array<i64: 1, 384>}, {pipeline_mode = #tpu.pipeline_mode<synchronous>, transform_indices = @transform_3, window_bounds = array<i64: 384, 128>}, {pipeline_mode = #tpu.pipeline_mode<synchronous>, transform_indices = @transform_4, window_bounds = array<i64: 1, 128>}, {transform_indices = @transform_5, window_bounds = array<i64: 1, 1, 128>}]} {
    %c0_i32 = arith.constant 0 : i32
    %0 = arith.cmpi eq, %arg1, %c0_i32 : i32
    %1 = arith.extui %0 : i1 to i32
    %c0_i32_0 = arith.constant 0 : i32
    %2 = arith.cmpi ne, %1, %c0_i32_0 : i32
    scf.if %2 {
      %cst_8 = arith.constant 0.000000e+00 : f32
      %11 = vector.broadcast %cst_8 : f32 to vector<1x4xf32>
      %c0_9 = arith.constant 0 : index
      %c0_10 = arith.constant 0 : index
      %12 = vector.load %arg8[%c0_9, %c0_10] : memref<1x4xf32, #tpu.memory_space<vmem>>, vector<1x4xf32>
      tpu.vector_store %arg8[%c0_9, %c0_10], %11 {strides = array<i32>} : memref<1x4xf32, #tpu.memory_space<vmem>>, vector<1x4xf32>,
    } else {
    }
    %c0 = arith.constant 0 : index
    %c0_1 = arith.constant 0 : index
    %3 = vector.load %arg8[%c0, %c0_1] : memref<1x4xf32, #tpu.memory_space<vmem>>, vector<1x4xf32>
    %c0_2 = arith.constant 0 : index
    %c0_3 = arith.constant 0 : index
    %c0_4 = arith.constant 0 : index
    %4 = vector.load %arg2[%c0_2, %c0_3, %c0_4] : memref<1x4x128xf32, #tpu.memory_space<vmem>>, vector<1x4x128xf32>
    %cst = arith.constant dense<0.000000e+00> : vector<1x4xf32>
    %5 = vector.multi_reduction <add>, %4, %cst [2] : vector<1x4x128xf32> to vector<1x4xf32>
    %6 = arith.addf %3, %5 : vector<1x4xf32>
    %c0_5 = arith.constant 0 : index
    %c0_6 = arith.constant 0 : index
    %7 = vector.load %arg8[%c0_5, %c0_6] : memref<1x4xf32, #tpu.memory_space<vmem>>, vector<1x4xf32>
    tpu.vector_store %arg8[%c0_5, %c0_6], %6 {strides = array<i32>} : memref<1x4xf32, #tpu.memory_space<vmem>>, vector<1x4xf32>,
    %c1_i32 = arith.constant 1 : i32
    %8 = arith.cmpi eq, %arg1, %c1_i32 : i32
    %9 = arith.extui %8 : i1 to i32
    %c0_i32_7 = arith.constant 0 : i32
    %10 = arith.cmpi ne, %9, %c0_i32_7 : i32
    scf.if %10 {
      %c0_8 = arith.constant 0 : index
      %c0_9 = arith.constant 0 : index
      %11 = vector.load %arg8[%c0_8, %c0_9] : memref<1x4xf32, #tpu.memory_space<vmem>>, vector<1x4xf32>
      %cst_10 = arith.constant 3.906250e-03 : f32
      %12 = vector.broadcast %cst_10 : f32 to vector<1x4xf32>
      %13 = arith.mulf %11, %12 : vector<1x4xf32>
      %14 = arith.truncf %13 : vector<1x4xf32> to vector<1x4xbf16>
      %c0_11 = arith.constant 0 : index
      %c0_12 = arith.constant 0 : index
      %15 = vector.load %arg3[%c0_11, %c0_12] : memref<4x384xbf16, #tpu.memory_space<vmem>>, vector<4x384xbf16>
      %cst_13 = arith.constant dense<0.000000e+00> : vector<1x384xf32>
      %16 = tpu.matmul %14, %15, %cst_13 {dimension_numbers = #tpu.dot_dimension_numbers<[1], [0], [0], [1], [0, 0, 1, 1], [], []>} : vector<1x4xbf16>, vector<4x384xbf16>, vector<1x384xf32> -> vector<1x384xf32>
      %c0_14 = arith.constant 0 : index
      %c0_15 = arith.constant 0 : index
      %17 = vector.load %arg4[%c0_14, %c0_15] : memref<1x384xf32, #tpu.memory_space<vmem>>, vector<1x384xf32>
      %18 = arith.addf %16, %17 : vector<1x384xf32>
      %cst_16 = arith.constant 0.000000e+00 : f32
      %19 = vector.broadcast %cst_16 : f32 to vector<1x384xf32>
      %20 = arith.maximumf %18, %19 : vector<1x384xf32>
      %21 = arith.truncf %20 : vector<1x384xf32> to vector<1x384xbf16>
      %c0_17 = arith.constant 0 : index
      %c0_18 = arith.constant 0 : index
      %22 = vector.load %arg5[%c0_17, %c0_18] : memref<384x128xbf16, #tpu.memory_space<vmem>>, vector<384x128xbf16>
      %cst_19 = arith.constant dense<0.000000e+00> : vector<1x128xf32>
      %23 = tpu.matmul %21, %22, %cst_19 {dimension_numbers = #tpu.dot_dimension_numbers<[1], [0], [0], [1], [0, 0, 1, 1], [], []>} : vector<1x384xbf16>, vector<384x128xbf16>, vector<1x128xf32> -> vector<1x128xf32>
      %c0_20 = arith.constant 0 : index
      %c0_21 = arith.constant 0 : index
      %24 = vector.load %arg6[%c0_20, %c0_21] : memref<1x128xf32, #tpu.memory_space<vmem>>, vector<1x128xf32>
      %25 = arith.addf %23, %24 : vector<1x128xf32>
      %cst_22 = arith.constant dense<0xFF800000> : vector<1xf32>
      %26 = vector.multi_reduction <maximumf>, %25, %cst_22 [1] : vector<1x128xf32> to vector<1xf32>
      %27 = vector.shape_cast %26 : vector<1xf32> to vector<1x1xf32>
      %28 = vector.broadcast %27 : vector<1x1xf32> to vector<1x128xf32>
      %29 = arith.subf %25, %28 : vector<1x128xf32>
      %30 = math.exp %29 : vector<1x128xf32>
      %cst_23 = arith.constant dense<0.000000e+00> : vector<1xf32>
      %31 = vector.multi_reduction <add>, %30, %cst_23 [1] : vector<1x128xf32> to vector<1xf32>
      %32 = vector.shape_cast %31 : vector<1xf32> to vector<1x1xf32>
      %33 = tpu.reciprocal %32 {approx = true} : vector<1x1xf32> -> vector<1x1xf32>
      %34 = vector.broadcast %33 : vector<1x1xf32> to vector<1x128xf32>
      %35 = arith.mulf %30, %34 : vector<1x128xf32>
      %c0_24 = arith.constant 0 : index
      %c0_25 = arith.constant 0 : index
      %c0_26 = arith.constant 0 : index
      %36 = vector.load %arg7[%c0_24, %c0_25, %c0_26] : memref<1x1x128xf32, #tpu.memory_space<vmem>>, vector<1x1x128xf32>
      %37 = vector.shape_cast %36 : vector<1x1x128xf32> to vector<1x128xf32>
      %38 = vector.shape_cast %35 : vector<1x128xf32> to vector<1x1x128xf32>
      tpu.vector_store %arg7[%c0_24, %c0_25, %c0_26], %38 {strides = array<i32>} : memref<1x1x128xf32, #tpu.memory_space<vmem>>, vector<1x1x128xf32>,
    } else {
    }
    return
  }
  func.func @transform_0(%arg0: i32, %arg1: i32) -> (i32, i32, i32) {
    %c0_i32 = arith.constant 0 : i32
    %c0_i32_0 = arith.constant 0 : i32
    return %arg0, %c0_i32, %arg1 : i32, i32, i32
  }
  func.func @transform_1(%arg0: i32, %arg1: i32) -> (i32, i32) {
    %c0_i32 = arith.constant 0 : i32
    %c0_i32_0 = arith.constant 0 : i32
    %c0_i32_1 = arith.constant 0 : i32
    return %c0_i32, %c0_i32_0 : i32, i32
  }
  func.func @transform_2(%arg0: i32, %arg1: i32) -> (i32, i32) {
    %c0_i32 = arith.constant 0 : i32
    %c0_i32_0 = arith.constant 0 : i32
    %c0_i32_1 = arith.constant 0 : i32
    return %c0_i32, %c0_i32_0 : i32, i32
  }
  func.func @transform_3(%arg0: i32, %arg1: i32) -> (i32, i32) {
    %c0_i32 = arith.constant 0 : i32
    %c0_i32_0 = arith.constant 0 : i32
    %c0_i32_1 = arith.constant 0 : i32
    return %c0_i32, %c0_i32_0 : i32, i32
  }
  func.func @transform_4(%arg0: i32, %arg1: i32) -> (i32, i32) {
    %c0_i32 = arith.constant 0 : i32
    %c0_i32_0 = arith.constant 0 : i32
    %c0_i32_1 = arith.constant 0 : i32
    return %c0_i32, %c0_i32_0 : i32, i32
  }
  func.func @transform_5(%arg0: i32, %arg1: i32) -> (i32, i32, i32) {
    %c0_i32 = arith.constant 0 : i32
    %c0_i32_0 = arith.constant 0 : i32
    %c0_i32_1 = arith.constant 0 : i32
    return %arg0, %c0_i32, %c0_i32_0 : i32, i32, i32
  }
}

</mosaic_0001>

<bundles_post_ra>
// kernel: tpu_custom_call.1
= control target key start
LH: loop header
LB: loop body
LE: loop exit
PB: predicated region body
PF: predicated region fallthrough
CT: control target
= control target key end

     0   :  { %s1759_s0 = inlined_call_operand.hbm [shape: f32[2,4,256], index: 0, kind: input, shape index: {}]   ;;  %s1760_s1 = inlined_call_operand.hbm [shape: bf16[4,384], index: 1, kind: input, shape index: {}]   ;;  %s1761_s2 = inlined_call_operand.vmem [shape: f32[1,384], index: 2, kind: input, shape index: {}]   ;;  %s1762_s3 = inlined_call_operand.hbm [shape: bf16[384,128], index: 3, kind: input, shape index: {}]   ;;  %s1763_s4 = inlined_call_operand.vmem [shape: f32[1,128], index: 4, kind: input, shape index: {}]   ;;  %s1764_s5 = inlined_call_operand.hbm [shape: f32[2,1,128], index: 5, kind: output, shape index: {}]  }
   0x1   :  { %1776 = sst [smem:[#allocation18_spill]] %s1760_s1 }
   0x2   :  { %1777 = sst [smem:[#allocation19_spill]] %s1761_s2 }
   0x3   :  { %1778 = sst [smem:[#allocation20_spill]] %s1762_s3 }
   0x4   :  { %1779 = sst [smem:[#allocation21_spill]] %s1763_s4 }
   0x5   :  { %1780 = sst [smem:[#allocation22_spill]] %s1764_s5 }
   0x6   :  { %10 = vsyncpa [#allocation4], 0 }
   0x7   :  { %12 = vsyncpa [#allocation4 + $0x1], 0 }
   0x8   :  { %13 = vsyncpa [#allocation7], 0 }
   0x9   :  { %14 = vsyncpa [#allocation5], 0 }
   0xa   :  { %16 = vsyncpa [#allocation5 + $0x1], 0  ;;  %s1426_s18 = smov 0   ;;  %s1428_s19 = smov 0  }
   0xb   :  { %s1430_s20 = smov 0   ;;  %s1432_s21 = smov 0  }
   0xc   :  { %s1434_s22 = smov 0   ;;  %s1436_s23 = smov 0  }
   0xd   :  { %s1438_s24 = smov 0   ;;  %s1440_s25 = smov 0  }
   0xe   :  { %s1442_s26 = smov 0   ;;  %s1444_s27 = smov 0  }
   0xf   :  { %s1446_s28 = smov 0  }
  0x10 LB: > { %1781 = sst [smem:[#allocation13_spill]] %s1341_s18  ;;  %s903_s29 = sadd.s32 4294967295, %s1381_s28   ;;  %s1381_s28 = sphi %s1446_s28, %s22_s28   ;;  %s1377_s27 = sphi %s1444_s27, %s1818_s27   ;;  %s1373_s26 = sphi %s1442_s26, %s1817_s26   ;;  %s1369_s25 = sphi %s1440_s25, %s1816_s25   ;;  %s1365_s24 = sphi %s1438_s24, %s1815_s24   ;;  %s1361_s23 = sphi %s1436_s23, %s1814_s23   ;;  %s1357_s22 = sphi %s1434_s22, %s1813_s22   ;;  %s1353_s21 = sphi %s1432_s21, %s1812_s21   ;;  %s1349_s20 = sphi %s1430_s20, %s1811_s20   ;;  %s1345_s19 = sphi %s1428_s19, %s1810_s19   ;;  %s1341_s18 = sphi %s1426_s18, %s1809_s18  }
  0x11   : > { %1782 = sst [smem:[#allocation14_spill]] %s1369_s25  ;;  %s904_s30 = sadd.s32 4294967294, %s1381_s28  }
  0x12   : > { %p56_p0 = scmp.ne.s32.totalorder %s1357_s22, %s1353_s21  ;;  %p1482_p1 = scmp.eq.s32.totalorder %s903_s29, 0 }
  0x13   : > { %p163_p2 = scmp.ne.s32.totalorder %s1349_s20, %s1345_s19  ;;  %p164_p3 = scmp.eq.s32.totalorder %s903_s29, 3 }
  0x14   : > { %s1783_s6 = scalar_select %p1482_p1, 1, 0 }
  0x15   : > { %p1490_p4 = por %p1482_p1, %p56_p0  ;;  %p169_p5 = scmp.ne.s32.totalorder %s1345_s19, %s1341_s18 }
  0x16   : > { %p1496_p6 = por %p164_p3, %p163_p2  ;;  %p170_p7 = scmp.eq.s32.totalorder %s904_s30, 3 }
  0x17   : > { %s1784_s7 = scalar_select %p1490_p4, 1, 0 }
  0x18   : > { %s1785_s8 = scalar_select %p1496_p6, 1, 0 }
  0x19   : > { %p905_p8 = scmp.ge.s32.totalorder %s1381_s28, 1  ;;  %p177_p9 = scmp.lt.s32.totalorder %s1381_s28, 5 }
  0x1a   : > { %1786 = sst [smem:[#allocation15_spill]] %s1785_s8  ;;  %p1502_p10 = por %p170_p7, %p169_p5 }
  0x1b   : > { %p1506_p11 = pnand %p905_p8, %p177_p9  ;;  %s1383_s11 = smov [#allocation6]  }
  0x1c   : > { %s1787_s9 = scalar_select %p1502_p10, 1, 0 }
  0x1d   : > { %s1789_s10 = scalar_select %p1506_p11, 1, 0 }
  0x1e   : > { %1788 = sst [smem:[#allocation16_spill]] %s1787_s9  ;;  %s190_s12 = sshll.u32 %s1383_s11, 4  ;;  %s191_s12 = int_to_ptr.vmem [resolvable:$true] %s190_s12 }
  0x1f   : > { %p1019_p12 = pneg %p1506_p11  ;;  %s1384_s14 = smov [#allocation8]  }
  0x20   : > { %s203_s15 = sshll.u32 %s1384_s14, 4  ;;  %s1791_s1 = sld [smem:[#allocation18_spill]]  ;;  %s1518_s15 = int_to_ptr.vmem [resolvable:$true] %s203_s15 }
  0x21   : > { %p1514_p13 = pnand %p1019_p12, %p1482_p1 }
  0x23   : > { %p1171_p2 = pneg %p1514_p13 }
  0x26   : > { %s1169_s21 = scalar_lea.hbm %s1791_s1, 96 }
  0x27   : > { %p1170_p0 = scmp.ne.s32.totalorder %s1791_s1, %s1169_s21  ;;  %p1176_p7 = scmp.lt.u32.totalorder %s1169_s21, %s1791_s1 }
  0x29   : > { %p1172_p3 = pnand %p1171_p2, %p1170_p0 }
  0x2b   : > { %p1173_p5 = pneg %p1172_p3 }
  0x2d   : > { %p1178_p8 = pnand %p1176_p7, %p1173_p5 }
  0x2f   : > { %1181 = shalt.err (!%p1178_p8)
}
  0x30   : > { %s1182_s14 = scalar_lea.vmem %s191_s12, 96  ;;  %p1190_p6 = scmp.lt.s32.totalorder %s191_s12, %s191_s12 }
  0x31   : > { %p1183_p9 = scmp.ne.s32.totalorder %s191_s12, %s1182_s14  ;;  %p1191_p1 = scmp.lt.s32.totalorder %s1182_s14, %s1182_s14 }
  0x33   : > { %p1185_p12 = pnand %p1183_p9, %p1171_p2  ;;  %p1192_p4 = por %p1191_p1, %p1190_p6 }
  0x35   : > { %p1186_p10 = pneg %p1185_p12 }
  0x37   : > { %p1193_p11 = pnand %p1192_p4, %p1186_p10 }
  0x39   : > { %1196 = shalt.err (!%p1193_p11)
}
  0x3a   : > { %1022 = dma.hbm_to_vmem [thread:$0]  (!%p1514_p13), %s1791_s1, 96, %s191_s12, [#allocation7]  }
  0x3b   : > { %s1792_s3 = sld [smem:[#allocation20_spill]] }
  0x41   : > { %s1197_s29 = scalar_lea.hbm %s1792_s3, 3072 }
  0x42   : > { %p1198_p0 = scmp.ne.s32.totalorder %s1792_s3, %s1197_s29  ;;  %p1204_p6 = scmp.lt.u32.totalorder %s1197_s29, %s1792_s3 }
  0x44   : > { %p1200_p1 = pnand %p1198_p0, %p1171_p2 }
  0x46   : > { %p1201_p4 = pneg %p1200_p1 }
  0x48   : > { %p1206_p10 = pnand %p1204_p6, %p1201_p4 }
  0x4a   : > { %1209 = shalt.err (!%p1206_p10)
}
  0x4b   : > { %s1210_s12 = scalar_lea.vmem %s1518_s15, 3072  ;;  %p1218_p7 = scmp.lt.s32.totalorder %s1518_s15, %s1518_s15 }
  0x4c   : > { %p1211_p11 = scmp.ne.s32.totalorder %s1518_s15, %s1210_s12  ;;  %p1219_p8 = scmp.lt.s32.totalorder %s1210_s12, %s1210_s12 }
  0x4e   : > { %p1213_p3 = pnand %p1211_p11, %p1171_p2  ;;  %p1220_p9 = por %p1219_p8, %p1218_p7 }
  0x50   : > { %p1214_p5 = pneg %p1213_p3 }
  0x52   : > { %p1221_p12 = pnand %p1220_p9, %p1214_p5 }
  0x54   : > { %1224 = shalt.err (!%p1221_p12)
}
  0x55   : > { %s1385_s18 = smov 64   ;;  %s1386_s16 = smov 4  }
  0x56   : > { %1025 = dma.hbm_to_vmem [thread:$0]  (!%p1514_p13), %s1792_s3, 3072, %s1518_s15, [#allocation7], %s1385_s18, %s1385_s18, %s1386_s16  }
  0x57   : > { %s31_s21 = sadd.s32 1, %s1373_s26  ;;  %s34_s29 = sadd.s32 1, %s1377_s27 }
  0x58   : > { %p32_p2 = scmp.ge.s32.totalorder %s31_s21, 2  ;;  %p50_p0 = scmp.ne.s32.totalorder %s1361_s23, %s1357_s22 }
  0x59   : > { %s43_s30 = sadd.s32 1, %s1361_s23  ;;  %p51_p1 = scmp.eq.s32.totalorder %s1381_s28, 0 }
  0x5a   : > { %s1820_s21 = smov (%p32_p2, %s31_s21), 0  ;;  %s1822_s29 = smov (!%p32_p2, %s34_s29), %s1377_s27 }
  0x5b   : > { %1793 = sst [smem:[#allocation17_spill]] %s1820_s21  ;;  %p36_p4 = scmp.ge.s32.totalorder %s1822_s29, 2 }
  0x5c   : > { %s39_s13 = ssub.s32 %s1373_s26, %s1820_s21  ;;  %p1578_p6 = por %p51_p1, %p50_p0 }
  0x5d   : > { %s153_s15 = sadd.s32 1, %s1349_s20  ;;  %s1824_s29 = smov (%p36_p4, %s1822_s29), 0 }
  0x5e   : > { %p1036_p13 = scmp.lt.s32.totalorder %s1381_s28, 4  ;;  %s220_s14 = sand.u32 1, %s1361_s23  }
  0x5f   : > { %s38_s12 = ssub.s32 %s1377_s27, %s1824_s29  ;;  %s910_s18 = sshll.u32 %s1377_s27, 1 }
  0x60   : > { %s40_s16 = sor.u32 %s39_s13, %s38_s12  ;;  %p151_p10 = scmp.eq.s32.totalorder %s38_s12, 0 }
  0x61   : > { %p41_p11 = scmp.eq.s32.totalorder %s40_s16, 0  ;;  %s909_s17 = sshll.u32 %s220_s14, 2 }
  0x62   : > { %s1591_s9 = scalar_select %p151_p10, %s1349_s20, %s153_s15  }
  0x63   : > { %s1594_s1 = scalar_select %p41_p11, %s1361_s23, %s43_s30  }
  0x64   : > { %s229_s3 = sadd.s32 %s1373_s26, %s910_s18  ;;  %s224_s5 = scalar_lea.vmem [#allocation3], %s909_s17 }
  0x65   : > { %s911_s21 = sshll.u32 %s229_s3, 6  ;;  %s233_s8 = sshll.u32 %s224_s5, 4  ;;  %s1602_s8 = int_to_ptr.vmem [resolvable:$true] %s233_s8 }
  0x66   : > { %s1600_s2 = scalar_lea.hbm %s1759_s0, %s911_s21  ;;  %p1608_p3 = pnand %p1036_p13, %p1578_p6 }
  0x67   : > { %s221_s3 = scalar_lea.sflag [#allocation4], %s220_s14  ;;  %s1225_s5 = scalar_lea.hbm %s1600_s2, 64 }
  0x68   : > { %p1226_p5 = scmp.ne.s32.totalorder %s1600_s2, %s1225_s5  ;;  %p1227_p7 = pneg %p1608_p3 }
  0x69   : > { %s1230_s21 = scalar_lea.hbm %s1759_s0, 256  ;;  %p1231_p12 = scmp.lt.u32.totalorder %s1600_s2, %s1759_s0 }
  0x6a   : > { %p1228_p8 = pnand %p1227_p7, %p1226_p5  ;;  %p1232_p2 = scmp.lt.u32.totalorder %s1230_s21, %s1225_s5 }
  0x6b   : > { %p1234_p1 = scmp.lt.u32.totalorder %s1225_s5, %s1600_s2 }
  0x6c   : > { %p1229_p9 = pneg %p1228_p8  ;;  %p1233_p0 = por %p1232_p2, %p1231_p12 }
  0x6e   : > { %p1235_p4 = por %p1234_p1, %p1233_p0 }
  0x70   : > { %p1236_p6 = pnand %p1235_p4, %p1229_p9 }
  0x72   : > { %1239 = shalt.err (!%p1236_p6)
}
  0x73   : > { %s1240_s15 = scalar_lea.vmem %s1602_s8, 64  ;;  %s1387_s14 = smov [#allocation3]  }
  0x74   : > { %p1241_p13 = scmp.ne.s32.totalorder %s1602_s8, %s1240_s15  ;;  %s1245_s12 = sshll.u32 %s1387_s14, 4  ;;  %s1246_s12 = int_to_ptr.vmem [resolvable:$false] %s1245_s12 }
  0x75   : > { %s1247_s18 = scalar_lea.vmem %s1246_s12, 128  ;;  %p1248_p5 = scmp.lt.s32.totalorder %s1602_s8, %s1246_s12 }
  0x76   : > { %p1243_p10 = pnand %p1241_p13, %p1227_p7  ;;  %p1249_p8 = scmp.lt.s32.totalorder %s1247_s18, %s1240_s15 }
  0x78   : > { %p1244_p11 = pneg %p1243_p10  ;;  %p1250_p12 = por %p1249_p8, %p1248_p5 }
  0x7a   : > { %p1251_p2 = pnand %p1250_p12, %p1244_p11 }
  0x7c   : > { %1254 = shalt.err (!%p1251_p2)
}
  0x7d   : > { %1029 = dma.hbm_to_vmem [thread:$0]  (!%p1608_p3), %s1600_s2, 64, %s1602_s8, %s221_s3  }
  0x7e   : > { %p1796_p9 = scmp.ne.s32.totalorder %s1789_s10, 0 }
  0x7f   : > { %s244_s16 = sand.u32 (!%p1796_p9), 1, %s1357_s22   ;;  %p1797_p7 = scmp.ne.s32.totalorder (!%p1796_p9), %s1784_s7, 0 }
  0x80   : > { %242 = sbr.rel (%p1796_p9) target bundleno = 1231 (0x4cf), region = 40  ;;  %s913_s17 = sshll.u32 (!%p1796_p9), %s244_s16, 2 }
  0x81   : > { %s245_s5 = scalar_lea.sflag (!%p1796_p9), [#allocation4], %s244_s16  ;;  %s248_s4 = scalar_lea.vmem (!%p1796_p9), [#allocation3], %s913_s17 }
  0x87   : > { %1328 = dma.done.wait (%p1797_p7), %s245_s5, 64  }
  0x88   : > { %1330 = vsyncadd (%p1797_p7), %s245_s5, 4294967232  ;;  %p1798_p0 = scmp.ne.s32.totalorder %s1783_s6, 0 }
  0x8a   : > { %1332 = dma.done.wait (%p1798_p0), [#allocation7], 3168  }
  0x8b   : > { %1334 = vsyncadd (%p1798_p0), [#allocation7], 4294964128  ;;  %s280_s2 = sand.u32 1, %s1345_s19   ;;  %p916_p3 = scmp.ne.s32.totalorder %s1365_s24, 0 }
  0x8c   : > { %s1651_s8 = scalar_lea.vmem [#allocation9], %s280_s2  ;;  %vm287_vm0 = vcmask (!%p916_p3), 24576   ;;  %v1388_v0 = vmov (!%p916_p3), 0.0  }
  0x8d   : > { %286 = sbr.rel (%p916_p3) target bundleno = 148 (0x94), region = 56  ;;  %288 = vst.msk [vmem:[#allocation2] sm:$0x1] (!%p916_p3), %vm287_vm0, %v1388_v0 }
  0x94 PF: > { %v290_v1 = vld [vmem:[%s248_s4] sm:$0xf]  ;;  %vm291_vm1 = vcmask 1043456   ;;  %v1389_v3 = vmov 0   ;;  %v296_v4 = vlaneseq  ;;  %v1390_v8 = vmov 1966171168  }
  0x95   : > { %v292_v2 = vsel %vm291_vm1, %v290_v1, 0.0  ;;  %1139 = vset.pattern.permute.xlu0 %v1389_v3  ;;  %v315_v9 = vunpack.c.l.s4 %v1390_v8  ;;  %v289_v30 = vld [vmem:[#allocation2] sm:$0x1]  ;;  %vm361_vm2 = vcmask 24576   ;;  %p917_p1 = scmp.ne.s32.totalorder %s1365_s24, 1 }
  0x96   : > { %293 = vadd.xlane.f32.xlu0 %v292_v2  ;;  %v1654_v5 = vshrl.u32 %v296_v4, 7  ;;  %v340_v6 = vand.u32 127, %v296_v4  ;;  %v1391_v33 = vmov (!%p917_p1), 1983009808   ;;  %v1392_v35 = vmov (!%p917_p1), 0   ;;  %v1141_v48 = vld [vmem:[#allocation8 + $0x40] sm:$0xff] (!%p917_p1)  }
  0x97   : > { %v316_v10 = vunpack.c.0.s8 %v315_v9  ;;  %v375_v34 = vunpack.c.l.s4 (!%p917_p1), %v1391_v33  ;;  %451 = vmatprep.mubr.bf16.mxu0 (!%p917_p1), %v1392_v35  ;;  %v370_v36 = vld [vmem:[#allocation6] sm:$0x3f] (!%p917_p1)  ;;  %v1393_v37 = vmov (!%p917_p1), 0.0   ;;  %vm1394_vm3 = vmmov (!%p917_p1), 0   ;;  %v1143_v49 = vld [vmem:[#allocation8 + $0x80] sm:$0xff] (!%p917_p1)   ;;  %v1144_v52 = vld [vmem:[#allocation8 + $0x48] sm:$0xff] (!%p917_p1)  }
  0x98   : > { %v343_v7 = vsub.s32 %v340_v6, %v1654_v5  ;;  %v298_v11 = vsub.s32 0, %v1654_v5  ;;  %v302_v12 = vsub.s32 1, %v1654_v5  ;;  %v306_v13 = vsub.s32 2, %v1654_v5  ;;  %981 = vmatprep.subr.bf16.mxu1 (!%p917_p1), %v1393_v37  ;;  %983 = vmatprep.mubr.msk.bf16.mxu1 (!%p917_p1), %vm1394_vm3, %v1393_v37  ;;  %v1142_v51 = vld [vmem:[#allocation8] sm:$0xff] (!%p917_p1)   ;;  %v1146_v53 = vld [vmem:[#allocation8 + $0x88] sm:$0xff] (!%p917_p1)   ;;  %v1147_v55 = vld [vmem:[#allocation8 + $0x50] sm:$0xff] (!%p917_p1)  }
  0x99   : > { %v310_v14 = vsub.s32 3, %v1654_v5  ;;  %v319_v16 = vsub.s32 %v316_v10, %v1654_v5  ;;  %v376_v38 = vunpack.c.0.s8 (!%p917_p1), %v375_v34  ;;  %v373_v39 = vcombine.high (!%p917_p1), %v370_v36, %v370_v36  ;;  %v1145_v54 = vld [vmem:[#allocation8 + $0x8] sm:$0xff] (!%p917_p1)   ;;  %v1148_v56 = vld [vmem:[#allocation8 + $0x10] sm:$0xff] (!%p917_p1)   ;;  %v1150_v58 = vld [vmem:[#allocation8 + $0x58] sm:$0xff] (!%p917_p1)   ;;  %s1799_s7 = sld [smem:[#allocation19_spill]] (!%p917_p1)  ;;  %s1800_s3 = sld [smem:[#allocation21_spill]] (!%p917_p1) }
  0x9a   : > { %vm409_vm4 = vcmask (!%p917_p1), 1041408   ;;  %vm405_vm5 = vcmask (!%p917_p1), 31744   ;;  %v1149_v57 = vld [vmem:[#allocation8 + $0x90] sm:$0xff] (!%p917_p1)   ;;  %v1152_v59 = vld [vmem:[#allocation8 + $0x98] sm:$0xff] (!%p917_p1)   ;;  %v1153_v61 = vld [vmem:[#allocation8 + $0x60] sm:$0xff] (!%p917_p1)   ;;  %vm779_vm6 = vcmask (!%p917_p1), 1040384  }
  0x9b   : > { %v379_v41 = vsub.s32 (!%p917_p1), %v376_v38, %v1654_v5  ;;  %v1151_v60 = vld [vmem:[#allocation8 + $0x18] sm:$0xff] (!%p917_p1)   ;;  %v1155_v62 = vld [vmem:[#allocation8 + $0xa0] sm:$0xff] (!%p917_p1)   ;;  %v1156_v0 = vld [vmem:[#allocation8 + $0x68] sm:$0xff] (!%p917_p1)  }
  0x9c   : > { %v1154_v63 = vld [vmem:[#allocation8 + $0x20] sm:$0xff] (!%p917_p1)   ;;  %v1157_v1 = vld [vmem:[#allocation8 + $0x28] sm:$0xff] (!%p917_p1)   ;;  %v1159_v3 = vld [vmem:[#allocation8 + $0x70] sm:$0xff] (!%p917_p1)  }
  0x9d   : > { %v380_v42 = vrot.slane (!%p917_p1), %v370_v36, %v379_v41  ;;  %v387_v44 = vrot.slane (!%p917_p1), %v373_v39, %v379_v41  ;;  %v1158_v2 = vld [vmem:[#allocation8 + $0xa8] sm:$0xff] (!%p917_p1)   ;;  %v1160_v4 = vld [vmem:[#allocation8 + $0x30] sm:$0xff] (!%p917_p1)   ;;  %v1163_v8 = vld [vmem:[#allocation8 + $0x38] sm:$0xff] (!%p917_p1)  }
  0x9e   : > { %v1161_v6 = vld [vmem:[#allocation8 + $0xb0] sm:$0xff] (!%p917_p1)   ;;  %v1164_v9 = vld [vmem:[#allocation8 + $0xb8] sm:$0xff] (!%p917_p1)  }
  0x9f   : > { %v388_v45 = vcombine.high (!%p917_p1), %v380_v42, %v380_v42  ;;  %v411_v46 = vsel (!%p917_p1), %vm409_vm4, %v380_v42, 0  ;;  %v417_v47 = vsel (!%p917_p1), %vm409_vm4, %v387_v44, 0  ;;  %v371_v10 = vld [vmem:[%s1799_s7] sm:$0x7] (!%p917_p1) }
  0xa0   : > { %982 = vmatpush3.bf16.msra.mxu1 (!%p917_p1), %v417_v47  ;;  %v554_v36 = vld [vmem:[%s1800_s3] sm:$0x1] (!%p917_p1) }
  0xa1   : > { %918 = vmatprep.subr.msk.bf16.mxu0 (!%p917_p1), %vm409_vm4, %v388_v45  ;;  %987 = vmatprep.subr.bf16.mxu1 (!%p917_p1), %v1393_v37 }
  0xa2   : > { %420 = vmatpush1.bf16.msra.mxu0 (!%p917_p1), %v411_v46 }
  0xa3   : > { %950 = vmatprep.subr.bf16.mxu0 (!%p917_p1), %v1141_v48 }
 0x123   : > { %v294_v15 = vpop.xlane.xlu0 %293 }
 0x124   : > { %v299_v17 = vrot.slane %v294_v15, %v298_v11  ;;  %v303_v18 = vrot.slane %v294_v15, %v302_v12  ;;  %v307_v19 = vrot.slane %v294_v15, %v306_v13  ;;  %v311_v20 = vrot.slane %v294_v15, %v310_v14 }
 0x125   : > { %v401_v14 = vrot.slane (!%p917_p1), %v371_v10, %v306_v13  ;;  %v393_v15 = vrot.slane (!%p917_p1), %v371_v10, %v298_v11 }
 0x126   : > { %v312_v21 = vcombine.low %v299_v17, %v303_v18  ;;  %v313_v22 = vcombine.low %v307_v19, %v311_v20 }
 0x128   : > { %v320_v23 = vrot.slane %v312_v21, %v319_v16  ;;  %v327_v24 = vrot.slane %v313_v22, %v319_v16 }
 0x12a   : > { %v328_v25 = vcombine.low %v320_v23, %v327_v24 }
 0x12c   : > { %v335_v26 = vrot.slane %v328_v25, %v319_v16 }
 0x12e   : > { %337 = vperm.xlu0 %1139, %v335_v26  }
 0x1ad   : > { %v338_v27 = vpop.permute.xlu0 %337 }
 0x1ae   : > { %v344_v28 = vrot.slane %v338_v27, %v343_v7  ;;  %v1162_v7 = vld [vmem:[#allocation8 + $0x78] sm:$0xff] (!%p917_p1)  }
 0x1b0   : > { %v351_v29 = vrot.slane %v344_v28, %v319_v16  ;;  %366 = sbr.rel (%p917_p1) target bundleno = 1204 (0x4b4), region = 60 }
 0x1b2   : > { %v358_v31 = vrot.slane %v351_v29, %v319_v16  ;;  %v397_v16 = vrot.slane (!%p917_p1), %v371_v10, %v302_v12 }
 0x1b4   : > { %v360_v32 = vadd.f32 %v358_v31, %v289_v30 }
 0x1b6   : > { %362 = vst.msk [vmem:[#allocation2] sm:$0x1] %vm361_vm2, %v360_v32 }
 0x1bd   : > { %v367_v40 = vld [vmem:[#allocation2] sm:$0x1] }
 0x1be   : > { %v368_v43 = vmul.f32 0.00390625, %v367_v40 }
 0x1c0   : > { %v369_v50 = vpack.c.bf16 %v368_v43, %v368_v43 }
 0x1c2   : > { %984 = vmatmul.mubr.msk.bf16.vlgmr.msra.gmra.mrb[0].mxu1 %vm405_vm5, %v369_v50  ;;  %919 = vmatmul.mubr.msk.bf16.vlgmr.msra.gmra.mrb[0].mxu0 %vm405_vm5, %v369_v50 }
 0x1c3   : > { %988 = vmatpush3.bf16.msra.mxu1 %v1143_v49  ;;  %1003 = vmatprep.mubr.msk.bf16.mxu1 %vm1394_vm3, %v1393_v37 }
 0x1c4   : > { %989 = vmatprep.subr.bf16.mxu1 %v1393_v37  ;;  %951 = vmatpush3.bf16.msra.mxu0 %v1142_v51 }
 0x1c5   : > { %952 = vmatprep.subr.bf16.mxu0 %v1144_v52 }
 0x1c7   : > { %990 = vmatpush3.bf16.msra.mxu1 %v1146_v53 }
 0x1c8   : > { %991 = vmatprep.subr.bf16.mxu1 %v1393_v37  ;;  %953 = vmatpush3.bf16.msra.mxu0 %v1145_v54 }
 0x1c9   : > { %954 = vmatprep.subr.bf16.mxu0 %v1147_v55 }
 0x1cb   : > { %992 = vmatpush3.bf16.msra.mxu1 %v1149_v57 }
 0x1cc   : > { %993 = vmatprep.subr.bf16.mxu1 %v1393_v37  ;;  %955 = vmatpush3.bf16.msra.mxu0 %v1148_v56 }
 0x1cd   : > { %956 = vmatprep.subr.bf16.mxu0 %v1150_v58 }
 0x1cf   : > { %994 = vmatpush3.bf16.msra.mxu1 %v1152_v59 }
 0x1d0   : > { %995 = vmatprep.subr.bf16.mxu1 %v1393_v37  ;;  %957 = vmatpush3.bf16.msra.mxu0 %v1151_v60 }
 0x1d1   : > { %958 = vmatprep.subr.bf16.mxu0 %v1153_v61 }
 0x1d3   : > { %996 = vmatpush3.bf16.msra.mxu1 %v1155_v62 }
 0x1d4   : > { %997 = vmatprep.subr.bf16.mxu1 %v1393_v37  ;;  %959 = vmatpush3.bf16.msra.mxu0 %v1154_v63 }
 0x1d5   : > { %960 = vmatprep.subr.bf16.mxu0 %v1156_v0 }
 0x1d7   : > { %998 = vmatpush3.bf16.msra.mxu1 %v1158_v2 }
 0x1d8   : > { %961 = vmatpush3.bf16.msra.mxu0 %v1157_v1  ;;  %999 = vmatprep.subr.bf16.mxu1 %v1393_v37 }
 0x1d9   : > { %962 = vmatprep.subr.bf16.mxu0 %v1159_v3 }
 0x1db   : > { %1000 = vmatpush3.bf16.msra.mxu1 %v1161_v6 }
 0x1dc   : > { %963 = vmatpush3.bf16.msra.mxu0 %v1160_v4  ;;  %1001 = vmatprep.subr.bf16.mxu1 %v1393_v37 }
 0x1dd   : > { %964 = vmatprep.subr.bf16.mxu0 %v1162_v7 }
 0x1df   : > { %1002 = vmatpush3.bf16.msra.mxu1 %v1164_v9 }
 0x1e0   : > { %965 = vmatpush3.bf16.msra.mxu0 %v1163_v8 }
 0x295   : > { %v494_v17 = vpop.f32.mrb[0].mxu1  ;;  %v453_v20 = vpop.f32.mrb[0].mxu0 }
 0x296   : > { %v495_v18 = vadd.f32 %v494_v17, %v401_v14  ;;  %v985_v19 = vpop.f32.mrb[1].mxu1  ;;  %v454_v22 = vadd.f32 %v453_v20, %v393_v15  ;;  %v455_v23 = vpop.f32.mrb[1].mxu0 }
 0x297   : > { %v497_v21 = vpop.f32.mrb[2].mxu1  ;;  %v456_v26 = vadd.f32 %v455_v23, %v397_v16  ;;  %v457_v27 = vpop.f32.mrb[2].mxu0 }
 0x298   : > { %v502_v24 = vmax.f32 %v495_v18, 0.0  ;;  %v986_v25 = vpop.f32.mrb[3].mxu1  ;;  %v500_v28 = vmax.f32 %v454_v22, 0.0  ;;  %v458_v29 = vpop.f32.mrb[3].mxu0 }
 0x299   : > { %v501_v30 = vmax.f32 %v456_v26, 0.0 }
 0x29a   : > { %v505_v13 = vpack.c.bf16 %v502_v24, %v502_v24  ;;  %v503_v31 = vpack.c.bf16 %v500_v28, %v500_v28 }
 0x29b   : > { %v504_v11 = vpack.c.bf16 %v501_v30, %v501_v30 }
 0x29c   : > { %1004 = vmatmul.mubr.bf16.vlgmr.msra.gmra.mrb[4].mxu1 %v505_v13 }
 0x29d   : > { %731 = vmatprep.mubr.bf16.mxu0 %v504_v11 }
 0x29e   : > { %732 = vmatmul.mubr.bf16.vlgmr.msra.gmra.mrb[4].mxu0 %v503_v31 }
 0x36f   : > { %v773_v5 = vpop.f32.mrb[4].mxu1 }
 0x370   : > { %v1005_v12 = vpop.f32.mrb[5].mxu1 }
 0x371   : > { %v776_v32 = vpop.f32.mrb[6].mxu1  ;;  %v966_v34 = vpop.f32.mrb[4].mxu0 }
 0x372   : > { %v1006_v33 = vpop.f32.mrb[7].mxu1  ;;  %v967_v35 = vpop.f32.mrb[5].mxu0 }
 0x373   : > { %v968_v37 = vadd.f32 %v967_v35, %v966_v34  ;;  %v969_v38 = vpop.f32.mrb[6].mxu0 }
 0x374   : > { %v970_v39 = vpop.f32.mrb[7].mxu0 }
 0x375   : > { %v734_v40 = vadd.f32 %v968_v37, %v554_v36 }
 0x377   : > { %v774_v41 = vadd.f32 %v773_v5, %v734_v40 }
 0x379   : > { %v780_v42 = vsel %vm779_vm6, %v774_v41, -inf }
 0x37a   : > { %781 = vmax.xlane.f32.xlu0 %v780_v42 }
 0x407   : > { %v782_v43 = vpop.xlane.xlu0 %781 }
 0x408   : > { %v783_v44 = vsub.f32 %v774_v41, %v782_v43 }
 0x40a   : > { %v784_v45 = vmul.f32 1.442695, %v783_v44 }
 0x40c   : > { %1165 = vpow2.f32 %v784_v45 }
 0x416   : > { %v1166_v46 = vpop.eup %1165 }
 0x417   : > { %v786_v47 = vsel %vm779_vm6, %v1166_v46, 0.0 }
 0x418   : > { %787 = vadd.xlane.f32.xlu0 %v786_v47 }
 0x4a5   : > { %v788_v48 = vpop.xlane.xlu0 %787 }
 0x4a6   : > { %1167 = vrcp.f32 %v788_v48 }
 0x4b0   : > { %v1168_v49 = vpop.eup %1167 }
 0x4b1   : > { %v790_v50 = vmul.f32 %v1168_v49, %v1166_v46 }
 0x4b3   : > { %791 = vst [vmem:[%s1651_s8] sm:$0x1] %v790_v50 }
 0x4b4 PF: > { %s1801_s25 = sld [smem:[#allocation14_spill]]  ;;  %s1802_s21 = sld [smem:[#allocation15_spill]] }
 0x4b5   : > { %s1803_s14 = sld [smem:[#allocation22_spill]]  ;;  %s805_s18 = sshll.u32 %s1651_s8, 4  ;;  %s806_s18 = int_to_ptr.vmem [resolvable:$true] %s805_s18 }
 0x4b6   : > { %s793_s16 = scalar_lea.sflag [#allocation5], %s280_s2  ;;  %s1255_s17 = scalar_lea.vmem %s806_s18, 16 }
 0x4b7   : > { %p1256_p4 = scmp.ne.s32.totalorder %s806_s18, %s1255_s17  ;;  %s1395_s5 = smov [#allocation9]  }
 0x4b8   : > { %s1259_s4 = sshll.u32 %s1395_s5, 4  ;;  %s1260_s4 = int_to_ptr.vmem [resolvable:$false] %s1259_s4 }
 0x4b9   : > { %s1261_s24 = scalar_lea.vmem %s1260_s4, 32  ;;  %p1262_p11 = scmp.lt.s32.totalorder %s806_s18, %s1260_s4 }
 0x4ba   : > { %s945_s13 = sshll.u32 %s1801_s25, 4  ;;  %p1804_p6 = scmp.ne.s32.totalorder %s1802_s21, 0 }
 0x4bb   : > { %s1700_s12 = scalar_lea.hbm %s1803_s14, %s945_s13  ;;  %p1263_p5 = scmp.lt.s32.totalorder %s1261_s24, %s1255_s17 }
 0x4bc   : > { %p1257_p13 = pnand %p1256_p4, %p1804_p6 }
 0x4bd   : > { %p1264_p8 = por %p1263_p5, %p1262_p11 }
 0x4be   : > { %p1258_p10 = pneg %p1257_p13 }
 0x4c0   : > { %p1265_p12 = pnand %p1264_p8, %p1258_p10 }
 0x4c2   : > { %1268 = shalt.err (!%p1265_p12)
}
 0x4c3   : > { %s1269_s2 = scalar_lea.hbm %s1700_s12, 16  ;;  %s1273_s7 = scalar_lea.hbm %s1803_s14, 32 }
 0x4c4   : > { %p1270_p2 = scmp.ne.s32.totalorder %s1700_s12, %s1269_s2  ;;  %p1274_p0 = scmp.lt.u32.totalorder %s1700_s12, %s1803_s14 }
 0x4c5   : > { %p1275_p3 = scmp.lt.u32.totalorder %s1273_s7, %s1269_s2  ;;  %p1277_p4 = scmp.lt.u32.totalorder %s1269_s2, %s1700_s12 }
 0x4c6   : > { %p1271_p9 = pnand %p1270_p2, %p1804_p6 }
 0x4c7   : > { %p1276_p1 = por %p1275_p3, %p1274_p0 }
 0x4c8   : > { %p1272_p7 = pneg %p1271_p9 }
 0x4c9   : > { %p1278_p13 = por %p1277_p4, %p1276_p1 }
 0x4cb   : > { %p1279_p10 = pnand %p1278_p13, %p1272_p7 }
 0x4cd   : > { %1282 = shalt.err (!%p1279_p10)
}
 0x4ce   : > { %1017 = dma.vmem_to_hbm [thread:$0]  (%p1804_p6), %s806_s18, 16, %s1700_s12, %s793_s16  }
 0x4cf PF: > { %s1805_s3 = sld [smem:[#allocation13_spill]]  ;;  %s1806_s25 = sld [smem:[#allocation16_spill]] }
 0x4d0   : > { %p1039_p11 = scmp.ge.s32.totalorder %s1381_s28, 2 }
 0x4d5   : > { %s817_s13 = sand.u32 1, %s1805_s3   ;;  %p1807_p5 = scmp.ne.s32.totalorder %s1806_s25, 0 }
 0x4d6   : > { %s818_s11 = scalar_lea.sflag [#allocation5], %s817_s13 }
 0x4d7   : > { %p1031_p8 = pnand %p1039_p11, %p1807_p5 }
 0x4d9   : > { %1336 = dma.done.wait (!%p1031_p8), %s818_s11, 16  }
 0x4da   : > { %1338 = vsyncadd (!%p1031_p8), %s818_s11, 4294967280  ;;  %s22_s28 = sadd.s32 1, %s1381_s28   ;;  %s1808_s15 = sld [smem:[#allocation17_spill]] }
 0x4db   : > { %p19_p12 = scmp.ge.s32.totalorder %s22_s28, 6   ;;  %s1809_s18 = smov %s1345_s19 }
 0x4dc   : > { %s1810_s19 = smov %s1349_s20  ;;  %s1811_s20 = smov %s1591_s9 }
 0x4dd   : > { %s1812_s21 = smov %s1357_s22  ;;  %s1813_s22 = smov %s1361_s23 }
 0x4de   : > { %s1814_s23 = smov %s1594_s1  ;;  %s1815_s24 = smov %s1373_s26 }
 0x4df   : > { %s1816_s25 = smov %s1377_s27  ;;  %s1818_s27 = smov %s1824_s29 }
 0x4e0   : > { %s1817_s26 = smov %s1808_s15  ;;  %21 = sbr.rel (!%p19_p12) target bundleno = 16 (0x10), region = 101 }
 0x4e7   :  { %822 = vsyncpa [#allocation4], 1 }
 0x4e8   :  { %824 = vsyncpa [#allocation4 + $0x1], 1 }
 0x4e9   :  { %825 = vsyncpa [#allocation7], 1 }
 0x4ea   :  { %826 = vsyncpa [#allocation5], 1 }
 0x4eb   :  { %828 = vsyncpa [#allocation5 + $0x1], 1 }

</bundles_post_ra>
